<compile_context>
chip_gen: v7x
topology: tpu7x:2x2x1
jax: 0.10.0
libtpu: 0.0.40
codegen_flags: <defaults>
</compile_context>

<pallas_src>
import jax
import jax.numpy as jnp
from jax.experimental import pallas as pl
from jax.experimental.pallas import tpu as pltpu

SUBLANE = 8


def _round_up(x, m):
    return (x + m - 1) // m * m


def key_proj_kernel(x_ref, w_ref, o_ref):
    # One M-tile of the bias-free key projection:
    #   (tile_m, E) @ (E, H) -> (tile_m, H), f32 operands, f32 accumulation.
    o_ref[...] = jnp.dot(
        x_ref[...], w_ref[...], preferred_element_type=jnp.float32
    ).astype(o_ref.dtype)


def key_projection(x, w_t, *, tile_m=4096):
    """x: (B, S, E) f32; w_t: (E, H) f32  ->  (B, S, H) f32."""
    B, S, E = x.shape
    E2, H = w_t.shape
    assert E == E2
    M = B * S

    # No cast, no pad: avoid extra full HBM read/write passes over x.
    x2d = x.reshape(M, E)

    # Tile size: big tiles amortize the ~0.35 us/step pipeline overhead; clamp
    # to M for tiny problems and cap so large problems still get >= 4 grid
    # steps (v7x megacore needs >1 step per TensorCore to shard the M axis).
    tile_m = min(tile_m, _round_up(M, SUBLANE))
    min_steps = 4
    if M > min_steps * SUBLANE:
        tile_m = min(tile_m, _round_up(pl.cdiv(M, min_steps), SUBLANE))
    tile_m = max(tile_m, SUBLANE)

    # Ragged last block is fine: rows are independent and OOB output rows are
    # dropped; OOB input rows feed garbage only into dropped output rows.
    grid = (pl.cdiv(M, tile_m),)

    flops = 2 * M * E * H
    bytes_accessed = (
        M * E * x2d.dtype.itemsize       # streamed activations
        + E * H * w_t.dtype.itemsize     # resident weight (fetched once)
        + M * H * 4                      # f32 output
    )

    out2d = pl.pallas_call(
        key_proj_kernel,
        out_shape=jax.ShapeDtypeStruct((M, H), jnp.float32),
        grid=grid,
        in_specs=[
            pl.BlockSpec((tile_m, E), lambda i: (i, 0)),   # stream M tiles
            pl.BlockSpec((E, H), lambda i: (0, 0)),        # weight stays VMEM-resident
        ],
        out_specs=pl.BlockSpec((tile_m, H), lambda i: (i, 0)),
        compiler_params=pltpu.CompilerParams(
            # M tiles are fully independent -> shard across v7x's 2 TensorCores
            # (no-op on single-TC v5e/v6e).
            dimension_semantics=("parallel",),
            vmem_limit_bytes=32 * 1024 * 1024,
        ),
        cost_estimate=pl.CostEstimate(
            flops=flops, bytes_accessed=bytes_accessed, transcendentals=0
        ),
    )(x2d, w_t)

    return out2d.reshape(B, S, H)


class TransformerModelPallas:
    """Mirror of the PyTorch module: holds the bias-free key projection weight."""

    def __init__(self, embedding_dim, head_size, key):
        # Deterministic init mimicking nn.Linear's uniform(-1/sqrt(fan_in), ...).
        bound = 1.0 / (embedding_dim ** 0.5)
        # PyTorch weight shape is (head_size, embedding_dim); store transposed
        # as (embedding_dim, head_size) so the kernel computes x @ W^T directly.
        w = jax.random.uniform(
            key, (head_size, embedding_dim), jnp.float32, -bound, bound
        )
        self.w_t = jnp.transpose(w)  # (E, H)

    def __call__(self, x):
        # TODO(synk): reference forward() is `pass` (returns None); we return
        # the key projection, the only compute implied by __init__.
        return key_projection(x, self.w_t)


if __name__ == "__main__":
    # Small shapes consistent with the module: batch=2, seq=8, embedding_dim=32,
    # head_size=16.
    B, S, E, H = 2, 8, 32, 16
    root = jax.random.PRNGKey(0)
    k_x, k_w = jax.random.split(root)

    x = jax.random.normal(k_x, (B, S, E), jnp.float32)
    model = TransformerModelPallas(E, H, k_w)

    out = model(x)
    out = jax.block_until_ready(out)

    # f32 reference. Tolerance is loose enough to cover the MXU's internal
    # bf16-pass decomposition of f32 matmuls under default precision.
    ref = jnp.einsum("bse,eh->bsh", x, model.w_t)
    assert out.shape == (B, S, H)
    assert out.dtype == jnp.float32
    assert jnp.allclose(out, ref, atol=2e-2, rtol=2e-2)

    print("KERNEL_OK")
</pallas_src>

<mosaic_0001>
module attributes {stable_mosaic.version = 11 : i64} {
  func.func @key_proj_kernel(%arg0: i32, %arg1: memref<16x32xf32, #tpu.memory_space<vmem>>, %arg2: memref<32x16xf32, #tpu.memory_space<vmem>>, %arg3: memref<16x16xf32, #tpu.memory_space<vmem>>) attributes {dimension_semantics = [#tpu.dimension_semantics<parallel>], iteration_bounds = array<i64: 1>, scalar_prefetch = 0 : i64, scratch_operands = 0 : i64, tpu.core_type = #tpu.core_type<tc>, window_params = [{transform_indices = @transform_0, window_bounds = array<i64: 16, 32>}, {pipeline_mode = #tpu.pipeline_mode<synchronous>, transform_indices = @transform_1, window_bounds = array<i64: 32, 16>}, {transform_indices = @transform_2, window_bounds = array<i64: 16, 16>}]} {
    %c0 = arith.constant 0 : index
    %c0_0 = arith.constant 0 : index
    %0 = vector.load %arg1[%c0, %c0_0] : memref<16x32xf32, #tpu.memory_space<vmem>>, vector<16x32xf32>
    %c0_1 = arith.constant 0 : index
    %c0_2 = arith.constant 0 : index
    %1 = vector.load %arg2[%c0_1, %c0_2] : memref<32x16xf32, #tpu.memory_space<vmem>>, vector<32x16xf32>
    %cst = arith.constant dense<0.000000e+00> : vector<16x16xf32>
    %2 = tpu.matmul %0, %1, %cst {dimension_numbers = #tpu.dot_dimension_numbers<[1], [0], [0], [1], [0, 0, 1, 1], [], []>} : vector<16x32xf32>, vector<32x16xf32>, vector<16x16xf32> -> vector<16x16xf32>
    %c0_3 = arith.constant 0 : index
    %c0_4 = arith.constant 0 : index
    %3 = vector.load %arg3[%c0_3, %c0_4] : memref<16x16xf32, #tpu.memory_space<vmem>>, vector<16x16xf32>
    tpu.vector_store %arg3[%c0_3, %c0_4], %2 {strides = array<i32>} : memref<16x16xf32, #tpu.memory_space<vmem>>, vector<16x16xf32>,
    return
  }
  func.func @transform_0(%arg0: i32) -> (i32, i32) {
    %c0_i32 = arith.constant 0 : i32
    %c0_i32_0 = arith.constant 0 : i32
    return %arg0, %c0_i32 : i32, i32
  }
  func.func @transform_1(%arg0: i32) -> (i32, i32) {
    %c0_i32 = arith.constant 0 : i32
    %c0_i32_0 = arith.constant 0 : i32
    %c0_i32_1 = arith.constant 0 : i32
    return %c0_i32, %c0_i32_0 : i32, i32
  }
  func.func @transform_2(%arg0: i32) -> (i32, i32) {
    %c0_i32 = arith.constant 0 : i32
    %c0_i32_0 = arith.constant 0 : i32
    return %arg0, %c0_i32 : i32, i32
  }
}

</mosaic_0001>

<bundles_post_ra>
// kernel: tpu_custom_call.1
= control target key start
LH: loop header
LB: loop body
LE: loop exit
PB: predicated region body
PF: predicated region fallthrough
CT: control target
= control target key end

     0   :  { %vm18_vm0 = vcmask 261120   ;;  %s221_s0 = inlined_call_operand.vmem [shape: f32[16,32], index: 0, kind: input, shape index: {}]   ;;  %s222_s1 = inlined_call_operand.vmem [shape: f32[32,16], index: 1, kind: input, shape index: {}]   ;;  %s223_s2 = inlined_call_operand.hbm [shape: f32[16,16], index: 2, kind: output, shape index: {}]  }
   0x1   :  { %v14_v0 = vld [vmem:[%s222_s1] sm:$0xff]  ;;  %v15_v1 = vld [vmem:[%s222_s1 + $0x8] sm:$0xff]  ;;  %v16_v2 = vld [vmem:[%s222_s1 + $0x10] sm:$0xff] }
   0x2   :  { %v138_v3 = vpack.c.bf16 %v15_v1, %v14_v0  ;;  %v17_v4 = vld [vmem:[%s222_s1 + $0x18] sm:$0xff]  ;;  %v12_v5 = vld [vmem:[%s221_s0] sm:$0xff] }
   0x3   :  { %v142_v6 = vpack.c.bf16 %v17_v4, %v16_v2  ;;  %135 = vmatprep.mubr.msk.f32.mxu0 %vm18_vm0, %v12_v5 }
   0x4   :  { %7 = vsyncpa [#allocation3], 0  ;;  %139 = vmatprep.subr.bf16.mxu0 %v138_v3  ;;  %v13_v7 = vld [vmem:[%s221_s0 + $0x8] sm:$0xff]  ;;  %s173_s21 = smov [#allocation2]   ;;  %vm100_vm1 = vcmask 130048  }
   0x5   :  { %141 = vmatpush3.bf16.msra.mxu0 %v138_v3  ;;  %s108_s22 = sshll.u32 %s173_s21, 4  ;;  %s109_s22 = int_to_ptr.vmem [resolvable:$true] %s108_s22 }
   0x6   :  { %143 = vmatprep.subr.bf16.mxu0 %v142_v6  ;;  %s149_s1 = scalar_lea.vmem %s109_s22, 256  ;;  %p154_p1 = scmp.lt.s32.totalorder %s109_s22, %s109_s22 }
   0x7   :  { %p150_p0 = scmp.ne.s32.totalorder %s109_s22, %s149_s1  ;;  %p155_p2 = scmp.lt.s32.totalorder %s149_s1, %s149_s1 }
   0x9   :  { %145 = vmatpush3.bf16.msra.mxu0 %v142_v6  ;;  %p156_p3 = por %p155_p2, %p154_p1 }
   0xb   :  { %p157_p4 = pnand %p156_p3, %p150_p0 }
   0xc   :  { %136 = vmatmul.mubr.msk.f32.vlgmr.msra.gmra.mrb[0].mxu0 %vm18_vm0, %v13_v7 }
  0xdf   :  { %v137_v8 = vpop.f32.mrb[0].mxu0 }
  0xe0   :  { %102 = vst.msk [vmem:[#allocation2 + $0x8] sm:$0xff] %vm100_vm1, %v137_v8  ;;  %v91_v9 = vpop.f32.mrb[1].mxu0 }
  0xe1   :  { %101 = vst.msk [vmem:[#allocation2] sm:$0xff] %vm100_vm1, %v91_v9 }
  0xe2   :  { %160 = shalt.err (!%p157_p4)
}
  0xe3   :  { %s161_s0 = scalar_lea.hbm %s223_s2, 256 }
  0xe4   :  { %p162_p5 = scmp.ne.s32.totalorder %s223_s2, %s161_s0  ;;  %p165_p6 = scmp.lt.u32.totalorder %s161_s0, %s223_s2 }
  0xe6   :  { %p167_p7 = pnand %p165_p6, %p162_p5 }
  0xe8   :  { %170 = shalt.err (!%p167_p7)
}
  0xe9   :  { %s174_s29 = smov 128   ;;  %s175_s30 = smov 8  }
  0xea   :  { %114 = dma.vmem_to_hbm [thread:$0]  %s109_s22, 256, %s223_s2, [#allocation3], %s174_s29, %s174_s29, %s175_s30  }
  0xeb   :  { %171 = dma.done.wait [#allocation3], 256  }
  0xec   :  { %172 = vsyncadd [#allocation3], 4294967040 }
  0xed   :  { %118 = vsyncpa [#allocation3], 1 }

</bundles_post_ra>
